<compile_context>
chip_gen: v5e
topology: v5e:2x2
jax: 0.10.0
libtpu: 0.0.40
codegen_flags: <defaults>
</compile_context>

<pallas_src>
import jax
import jax.numpy as jnp
from jax.experimental import pallas as pl
from jax.experimental.pallas import tpu as pltpu


def _round_up(x, m):
    return (x + m - 1) // m * m


def _estimator_kernel(ids_ref, embt_ref, w_ref, b_ref, out_ref):
    """Fused EmbeddingBag(mean) + Linear(H,1) + Sigmoid for one batch block.

    ids_ref  : (TILE_B, L)     int32   token ids, batch on sublanes
    embt_ref : (H_pad, V_pad)  float   transposed embedding table, vocab lane-dense
    w_ref    : (H_pad, 1)      float   fc weight column
    b_ref    : (1, 1)          f32     fc bias (SMEM scalar)
    out_ref  : (TILE_B, 1)     f32     sigmoid(logit) for this batch block (one store/block)
    """
    TB, L = ids_ref.shape
    Hp, Vp = embt_ref.shape

    # ---- fused projection: ew[v] = sum_h E[v, h] * w[h]  -> lane-dense (1, V_pad) --------
    # VPU multiply + XLU sublane reduce over H; no N=1 MXU matmul, no HBM round trip.
    et = embt_ref[...].astype(jnp.float32)                  # (Hp, Vp)
    w = w_ref[...].astype(jnp.float32)                      # (Hp, 1)
    ew_row = jnp.sum(et * w, axis=0, keepdims=True)         # (1, Vp)

    # Hoisted broadcasts (JAX does not CSE broadcast_in_dim inside loops).
    ew_b = jnp.broadcast_to(ew_row, (TB, Vp))               # sublane broadcast, ~free
    iota_v = jax.lax.broadcasted_iota(jnp.int32, (TB, Vp), 1)

    ids = ids_ref[...]                                       # (TB, L) int32, one block load

    # ---- mean bag: logits[b] = (1/L) * sum_s ew[ids[b, s]] --------------------------------
    acc = jnp.zeros((TB, 1), jnp.float32)
    for s in range(L):                                       # L static & small (sentence len)
        ids_s = ids[:, s:s + 1]                              # (TB, 1) static lane slice
        hit = iota_v == ids_s                                # (TB, Vp) bool, int compare
        # select ew where the token matches; XLU lane-reduce into the small accumulator
        acc = acc + jnp.sum(jnp.where(hit, ew_b, 0.0), axis=1, keepdims=True)

    logits = acc * (1.0 / L) + b_ref[0, 0]
    # Dropout is eval-mode identity.  TODO(synk): training-mode dropout (PRNG masking).
    out_ref[...] = jax.nn.sigmoid(logits)


def estimator_forward(text, emb_weight, fc_weight, fc_bias):
    """text: (B, L) int; emb_weight: (V, H); fc_weight: (1, H); fc_bias: (1,). Returns (B, 1) f32."""
    B, L = text.shape
    V, H = emb_weight.shape

    # PyTorch's EmbeddingBag raises on out-of-range ids; we clamp instead (documented).
    ids = jnp.clip(text.astype(jnp.int32), 0, V - 1)

    # ---- host-side layout plumbing ---------------------------------------------------------
    V_pad = _round_up(V, 128)                  # vocab on lanes
    H_pad = _round_up(H, 8)                    # hidden on sublanes
    if B <= 128:
        B_pad = TILE_B = _round_up(B, 8)       # single batch block
    else:
        TILE_B = 128
        B_pad = _round_up(B, TILE_B)           # >=2 "parallel" blocks -> both v7x cores busy

    # Transposed, zero-padded table (padded vocab columns get ew = 0 and are never referenced).
    emb_t = jnp.pad(emb_weight.T, ((0, H_pad - H), (0, V_pad - V)))
    w_col = jnp.pad(fc_weight.reshape(H, 1), ((0, H_pad - H), (0, 0)))
    bias = fc_bias.reshape(1, 1).astype(jnp.float32)
    ids_p = jnp.pad(ids, ((0, B_pad - B), (0, 0)))           # padded bags read token 0

    # VMEM budget: table + ids blocks (double-buffered) + in-kernel (TB, V_pad) intermediates.
    esz = emb_t.dtype.itemsize
    est = (2 * (H_pad * V_pad * esz + TILE_B * L * 4 + H_pad * 128 * 4 + TILE_B * 128 * 4)
           + 4 * TILE_B * V_pad * 4 + (1 << 20))
    vmem_limit = int(min(max(est, 8 << 20), 32 << 20))       # stay within v7x scoped default

    out = pl.pallas_call(
        _estimator_kernel,
        out_shape=jax.ShapeDtypeStruct((B_pad, 1), jnp.float32),
        grid=(B_pad // TILE_B,),
        in_specs=[
            pl.BlockSpec((TILE_B, L), lambda i: (i, 0)),            # token ids
            pl.BlockSpec((H_pad, V_pad), lambda i: (0, 0)),         # transposed table (resident)
            pl.BlockSpec((H_pad, 1), lambda i: (0, 0)),             # fc weight column
            pl.BlockSpec((1, 1), lambda i: (0, 0),
                         memory_space=pltpu.MemorySpace.SMEM),      # fc bias scalar
        ],
        out_specs=pl.BlockSpec((TILE_B, 1), lambda i: (i, 0)),
        compiler_params=pltpu.CompilerParams(
            dimension_semantics=("parallel",),
            vmem_limit_bytes=vmem_limit),
    )(ids_p, emb_t, w_col, bias)

    return out[:B]


def _reference(text, emb_weight, fc_weight, fc_bias):
    # Pure-JAX reference of the PyTorch forward (eval mode).
    bags = jnp.mean(emb_weight[text], axis=1)               # (B, H) EmbeddingBag mean
    logits = bags @ fc_weight.T + fc_bias                   # (B, 1)
    return jax.nn.sigmoid(logits)


if __name__ == "__main__":
    hidden_dim = 32
    vocab_len = 64
    batch, seq_len = 2, 8

    key = jax.random.PRNGKey(0)
    k_emb, k_fc, k_txt = jax.random.split(key, 3)

    initrange = 0.5
    emb_weight = jax.random.uniform(
        k_emb, (vocab_len, hidden_dim), jnp.float32, -initrange, initrange)
    fc_weight = jax.random.uniform(
        k_fc, (1, hidden_dim), jnp.float32, -initrange, initrange)
    fc_bias = jnp.zeros((1,), jnp.float32)

    text = jax.random.randint(k_txt, (batch, seq_len), 0, vocab_len, jnp.int32)

    fwd = jax.jit(estimator_forward)

    out = jax.block_until_ready(fwd(text, emb_weight, fc_weight, fc_bias))
    ref = _reference(text, emb_weight, fc_weight, fc_bias)
    assert out.shape == (batch, 1)
    assert jnp.allclose(out, ref, atol=1e-5, rtol=1e-5)

    # Nonzero bias path.
    fc_bias2 = jnp.full((1,), 0.123, jnp.float32)
    out2 = jax.block_until_ready(fwd(text, emb_weight, fc_weight, fc_bias2))
    ref2 = _reference(text, emb_weight, fc_weight, fc_bias2)
    assert jnp.allclose(out2, ref2, atol=1e-5, rtol=1e-5)

    # bf16 table path (halves HBM->VMEM bytes of the dominant stream; kernel computes in f32).
    out3 = jax.block_until_ready(fwd(text, emb_weight.astype(jnp.bfloat16), fc_weight, fc_bias))
    assert out3.shape == (batch, 1)
    assert jnp.allclose(out3, ref, atol=3e-2, rtol=3e-2)

    print("KERNEL_OK")
</pallas_src>

<mosaic_0001>
module attributes {stable_mosaic.version = 11 : i64} {
  func.func @_estimator_kernel(%arg0: i32, %arg1: memref<8x8xi32, #tpu.memory_space<vmem>>, %arg2: memref<32x128xf32, #tpu.memory_space<vmem>>, %arg3: memref<32x1xf32, #tpu.memory_space<vmem>>, %arg4: memref<1x1xf32, #tpu.memory_space<smem>>, %arg5: memref<8x1xf32, #tpu.memory_space<vmem>>) attributes {dimension_semantics = [#tpu.dimension_semantics<parallel>], iteration_bounds = array<i64: 1>, scalar_prefetch = 0 : i64, scratch_operands = 0 : i64, tpu.core_type = #tpu.core_type<tc>, window_params = [{transform_indices = @transform_0, window_bounds = array<i64: 8, 8>}, {pipeline_mode = #tpu.pipeline_mode<synchronous>, transform_indices = @transform_1, window_bounds = array<i64: 32, 128>}, {pipeline_mode = #tpu.pipeline_mode<synchronous>, transform_indices = @transform_2, window_bounds = array<i64: 32, 1>}, {transform_indices = @transform_3, window_bounds = array<i64: 1, 1>}, {transform_indices = @transform_4, window_bounds = array<i64: 8, 1>}]} {
    %c0 = arith.constant 0 : index
    %c0_0 = arith.constant 0 : index
    %0 = vector.load %arg2[%c0, %c0_0] : memref<32x128xf32, #tpu.memory_space<vmem>>, vector<32x128xf32>
    %c0_1 = arith.constant 0 : index
    %c0_2 = arith.constant 0 : index
    %1 = vector.load %arg3[%c0_1, %c0_2] : memref<32x1xf32, #tpu.memory_space<vmem>>, vector<32x1xf32>
    %2 = vector.broadcast %1 : vector<32x1xf32> to vector<32x128xf32>
    %3 = arith.mulf %0, %2 : vector<32x128xf32>
    %cst = arith.constant dense<0.000000e+00> : vector<128xf32>
    %4 = vector.multi_reduction <add>, %3, %cst [0] : vector<32x128xf32> to vector<128xf32>
    %5 = vector.shape_cast %4 : vector<128xf32> to vector<1x128xf32>
    %6 = vector.shape_cast %5 : vector<1x128xf32> to vector<1x128xf32>
    %7 = vector.broadcast %6 : vector<1x128xf32> to vector<8x128xf32>
    %8 = tpu.iota {dimensions = array<i32: 1>} : vector<8x128xi32>
    %c0_3 = arith.constant 0 : index
    %c0_4 = arith.constant 0 : index
    %9 = vector.load %arg1[%c0_3, %c0_4] : memref<8x8xi32, #tpu.memory_space<vmem>>, vector<8x8xi32>
    %cst_5 = arith.constant 0.000000e+00 : f32
    %10 = vector.broadcast %cst_5 : f32 to vector<8x1xf32>
    %11 = vector.extract_strided_slice %9 {offsets = [0, 0], sizes = [8, 1], strides = [1, 1]} : vector<8x8xi32> to vector<8x1xi32>
    %12 = vector.broadcast %11 : vector<8x1xi32> to vector<8x128xi32>
    %13 = arith.cmpi eq, %8, %12 : vector<8x128xi32>
    %cst_6 = arith.constant 0.000000e+00 : f32
    %14 = vector.broadcast %cst_6 : f32 to vector<8x128xf32>
    %15 = arith.select %13, %7, %14 : vector<8x128xi1>, vector<8x128xf32>
    %cst_7 = arith.constant dense<0.000000e+00> : vector<8xf32>
    %16 = vector.multi_reduction <add>, %15, %cst_7 [1] : vector<8x128xf32> to vector<8xf32>
    %17 = vector.shape_cast %16 : vector<8xf32> to vector<8x1xf32>
    %18 = arith.addf %10, %17 : vector<8x1xf32>
    %19 = vector.extract_strided_slice %9 {offsets = [0, 1], sizes = [8, 1], strides = [1, 1]} : vector<8x8xi32> to vector<8x1xi32>
    %20 = vector.broadcast %19 : vector<8x1xi32> to vector<8x128xi32>
    %21 = arith.cmpi eq, %8, %20 : vector<8x128xi32>
    %cst_8 = arith.constant 0.000000e+00 : f32
    %22 = vector.broadcast %cst_8 : f32 to vector<8x128xf32>
    %23 = arith.select %21, %7, %22 : vector<8x128xi1>, vector<8x128xf32>
    %cst_9 = arith.constant dense<0.000000e+00> : vector<8xf32>
    %24 = vector.multi_reduction <add>, %23, %cst_9 [1] : vector<8x128xf32> to vector<8xf32>
    %25 = vector.shape_cast %24 : vector<8xf32> to vector<8x1xf32>
    %26 = arith.addf %18, %25 : vector<8x1xf32>
    %27 = vector.extract_strided_slice %9 {offsets = [0, 2], sizes = [8, 1], strides = [1, 1]} : vector<8x8xi32> to vector<8x1xi32>
    %28 = vector.broadcast %27 : vector<8x1xi32> to vector<8x128xi32>
    %29 = arith.cmpi eq, %8, %28 : vector<8x128xi32>
    %cst_10 = arith.constant 0.000000e+00 : f32
    %30 = vector.broadcast %cst_10 : f32 to vector<8x128xf32>
    %31 = arith.select %29, %7, %30 : vector<8x128xi1>, vector<8x128xf32>
    %cst_11 = arith.constant dense<0.000000e+00> : vector<8xf32>
    %32 = vector.multi_reduction <add>, %31, %cst_11 [1] : vector<8x128xf32> to vector<8xf32>
    %33 = vector.shape_cast %32 : vector<8xf32> to vector<8x1xf32>
    %34 = arith.addf %26, %33 : vector<8x1xf32>
    %35 = vector.extract_strided_slice %9 {offsets = [0, 3], sizes = [8, 1], strides = [1, 1]} : vector<8x8xi32> to vector<8x1xi32>
    %36 = vector.broadcast %35 : vector<8x1xi32> to vector<8x128xi32>
    %37 = arith.cmpi eq, %8, %36 : vector<8x128xi32>
    %cst_12 = arith.constant 0.000000e+00 : f32
    %38 = vector.broadcast %cst_12 : f32 to vector<8x128xf32>
    %39 = arith.select %37, %7, %38 : vector<8x128xi1>, vector<8x128xf32>
    %cst_13 = arith.constant dense<0.000000e+00> : vector<8xf32>
    %40 = vector.multi_reduction <add>, %39, %cst_13 [1] : vector<8x128xf32> to vector<8xf32>
    %41 = vector.shape_cast %40 : vector<8xf32> to vector<8x1xf32>
    %42 = arith.addf %34, %41 : vector<8x1xf32>
    %43 = vector.extract_strided_slice %9 {offsets = [0, 4], sizes = [8, 1], strides = [1, 1]} : vector<8x8xi32> to vector<8x1xi32>
    %44 = vector.broadcast %43 : vector<8x1xi32> to vector<8x128xi32>
    %45 = arith.cmpi eq, %8, %44 : vector<8x128xi32>
    %cst_14 = arith.constant 0.000000e+00 : f32
    %46 = vector.broadcast %cst_14 : f32 to vector<8x128xf32>
    %47 = arith.select %45, %7, %46 : vector<8x128xi1>, vector<8x128xf32>
    %cst_15 = arith.constant dense<0.000000e+00> : vector<8xf32>
    %48 = vector.multi_reduction <add>, %47, %cst_15 [1] : vector<8x128xf32> to vector<8xf32>
    %49 = vector.shape_cast %48 : vector<8xf32> to vector<8x1xf32>
    %50 = arith.addf %42, %49 : vector<8x1xf32>
    %51 = vector.extract_strided_slice %9 {offsets = [0, 5], sizes = [8, 1], strides = [1, 1]} : vector<8x8xi32> to vector<8x1xi32>
    %52 = vector.broadcast %51 : vector<8x1xi32> to vector<8x128xi32>
    %53 = arith.cmpi eq, %8, %52 : vector<8x128xi32>
    %cst_16 = arith.constant 0.000000e+00 : f32
    %54 = vector.broadcast %cst_16 : f32 to vector<8x128xf32>
    %55 = arith.select %53, %7, %54 : vector<8x128xi1>, vector<8x128xf32>
    %cst_17 = arith.constant dense<0.000000e+00> : vector<8xf32>
    %56 = vector.multi_reduction <add>, %55, %cst_17 [1] : vector<8x128xf32> to vector<8xf32>
    %57 = vector.shape_cast %56 : vector<8xf32> to vector<8x1xf32>
    %58 = arith.addf %50, %57 : vector<8x1xf32>
    %59 = vector.extract_strided_slice %9 {offsets = [0, 6], sizes = [8, 1], strides = [1, 1]} : vector<8x8xi32> to vector<8x1xi32>
    %60 = vector.broadcast %59 : vector<8x1xi32> to vector<8x128xi32>
    %61 = arith.cmpi eq, %8, %60 : vector<8x128xi32>
    %cst_18 = arith.constant 0.000000e+00 : f32
    %62 = vector.broadcast %cst_18 : f32 to vector<8x128xf32>
    %63 = arith.select %61, %7, %62 : vector<8x128xi1>, vector<8x128xf32>
    %cst_19 = arith.constant dense<0.000000e+00> : vector<8xf32>
    %64 = vector.multi_reduction <add>, %63, %cst_19 [1] : vector<8x128xf32> to vector<8xf32>
    %65 = vector.shape_cast %64 : vector<8xf32> to vector<8x1xf32>
    %66 = arith.addf %58, %65 : vector<8x1xf32>
    %67 = vector.extract_strided_slice %9 {offsets = [0, 7], sizes = [8, 1], strides = [1, 1]} : vector<8x8xi32> to vector<8x1xi32>
    %68 = vector.broadcast %67 : vector<8x1xi32> to vector<8x128xi32>
    %69 = arith.cmpi eq, %8, %68 : vector<8x128xi32>
    %cst_20 = arith.constant 0.000000e+00 : f32
    %70 = vector.broadcast %cst_20 : f32 to vector<8x128xf32>
    %71 = arith.select %69, %7, %70 : vector<8x128xi1>, vector<8x128xf32>
    %cst_21 = arith.constant dense<0.000000e+00> : vector<8xf32>
    %72 = vector.multi_reduction <add>, %71, %cst_21 [1] : vector<8x128xf32> to vector<8xf32>
    %73 = vector.shape_cast %72 : vector<8xf32> to vector<8x1xf32>
    %74 = arith.addf %66, %73 : vector<8x1xf32>
    %cst_22 = arith.constant 1.250000e-01 : f32
    %75 = vector.broadcast %cst_22 : f32 to vector<8x1xf32>
    %76 = arith.mulf %74, %75 : vector<8x1xf32>
    %c0_23 = arith.constant 0 : index
    %c0_24 = arith.constant 0 : index
    %77 = memref.load %arg4[%c0_23, %c0_24] : memref<1x1xf32, #tpu.memory_space<smem>>
    %78 = vector.broadcast %77 : f32 to vector<8x1xf32>
    %79 = arith.addf %76, %78 : vector<8x1xf32>
    %80 = arith.negf %79 : vector<8x1xf32>
    %81 = math.exp %80 : vector<8x1xf32>
    %cst_25 = arith.constant 1.000000e+00 : f32
    %82 = vector.broadcast %cst_25 : f32 to vector<8x1xf32>
    %83 = arith.addf %82, %81 : vector<8x1xf32>
    %84 = arith.divf %82, %83 : vector<8x1xf32>
    %c0_26 = arith.constant 0 : index
    %c0_27 = arith.constant 0 : index
    %85 = vector.load %arg5[%c0_26, %c0_27] : memref<8x1xf32, #tpu.memory_space<vmem>>, vector<8x1xf32>
    tpu.vector_store %arg5[%c0_26, %c0_27], %84 {strides = array<i32>} : memref<8x1xf32, #tpu.memory_space<vmem>>, vector<8x1xf32>,
    return
  }
  func.func @transform_0(%arg0: i32) -> (i32, i32) {
    %c0_i32 = arith.constant 0 : i32
    %c0_i32_0 = arith.constant 0 : i32
    return %arg0, %c0_i32 : i32, i32
  }
  func.func @transform_1(%arg0: i32) -> (i32, i32) {
    %c0_i32 = arith.constant 0 : i32
    %c0_i32_0 = arith.constant 0 : i32
    %c0_i32_1 = arith.constant 0 : i32
    return %c0_i32, %c0_i32_0 : i32, i32
  }
  func.func @transform_2(%arg0: i32) -> (i32, i32) {
    %c0_i32 = arith.constant 0 : i32
    %c0_i32_0 = arith.constant 0 : i32
    %c0_i32_1 = arith.constant 0 : i32
    return %c0_i32, %c0_i32_0 : i32, i32
  }
  func.func @transform_3(%arg0: i32) -> (i32, i32) {
    %c0_i32 = arith.constant 0 : i32
    %c0_i32_0 = arith.constant 0 : i32
    %c0_i32_1 = arith.constant 0 : i32
    return %c0_i32, %c0_i32_0 : i32, i32
  }
  func.func @transform_4(%arg0: i32) -> (i32, i32) {
    %c0_i32 = arith.constant 0 : i32
    %c0_i32_0 = arith.constant 0 : i32
    return %arg0, %c0_i32 : i32, i32
  }
}

</mosaic_0001>

<bundles_post_ra>
// kernel: estimator_forward.1
= control target key start
LH: loop header
LB: loop body
LE: loop exit
PB: predicated region body
PF: predicated region fallthrough
CT: control target
= control target key end

     0   :  { %v179_v0 = vmov 0   ;;  %v180_v6 = vmov 3   ;;  %v181_v7 = vmov 1   ;;  %v182_v8 = vmov 4   ;;  %s255_s2 = inlined_call_operand.vmem [shape: f32[32,1], index: 2, kind: input, shape index: {}]   ;;  %s256_s0 = inlined_call_operand.vmem [shape: s32[8,8], index: 0, kind: input, shape index: {}]   ;;  %s257_s1 = inlined_call_operand.vmem [shape: f32[32,128], index: 1, kind: input, shape index: {}]   ;;  %s258_s3 = inlined_call_operand.<no memory space> [shape: f32[1,1], index: 3, kind: input, shape index: {}]   ;;  %s259_s4 = inlined_call_operand.vmem [shape: f32[8,1], index: 4, kind: output, shape index: {}]  }
   0x1   :  { %165 = vset.pattern.permute.xlu1 %v179_v0  ;;  %164 = vset.pattern.permute.xlu0 %v179_v0  ;;  %v24_v1 = vld [vmem:[%s255_s2 + $0x10] sm:$0xff]  ;;  %v22_v2 = vld [vmem:[%s255_s2] sm:$0xff]  ;;  %v25_v4 = vld [vmem:[%s255_s2 + $0x18] sm:$0xff]  ;;  %v183_v9 = vmov 5   ;;  %v184_v10 = vmov 2   ;;  %v185_v11 = vmov 6   ;;  %v59_v30 = vlaneseq }
   0x2   :  { %38 = vperm.xlu1 %165, %v24_v1   ;;  %28 = vperm.xlu0 %164, %v22_v2   ;;  %v221_v3 = vld [vmem:[%s256_s0] sm:$0xff]  ;;  %v23_v5 = vld [vmem:[%s255_s2 + $0x8] sm:$0xff]  ;;  %v20_v16 = vld [vmem:[%s257_s1 + $0x10] sm:$0xff]  ;;  %v186_v27 = vmov 7   ;;  %vm149_vm10 = vcmask 7168  }
   0x3   :  { %166 = vset.pattern.permute.xlu2 %v179_v0  ;;  %v18_v14 = vld [vmem:[%s257_s1] sm:$0xff]  ;;  %v19_v15 = vld [vmem:[%s257_s1 + $0x8] sm:$0xff]  ;;  %v21_v21 = vld [vmem:[%s257_s1 + $0x18] sm:$0xff]  ;;  %v60_v34 = vand.u32 127, %v59_v30 }
   0x4   :  { %63 = vperm.xlu2 %166, %v221_v3  }
   0xa   :  { %43 = vperm.xlu1 %165, %v25_v4   ;;  %33 = vperm.xlu0 %164, %v23_v5  }
   0xc   :  { %169 = vset.pattern.permute.xlu2 %v180_v6 }
   0xd   :  { %87 = vperm.xlu2 %169, %v221_v3  }
  0x12   :  { %167 = vset.pattern.permute.xlu0 %v181_v7  ;;  %170 = vset.pattern.permute.xlu1 %v182_v8 }
  0x13   :  { %71 = vperm.xlu0 %167, %v221_v3   ;;  %95 = vperm.xlu1 %170, %v221_v3  }
  0x15   :  { %171 = vset.pattern.permute.xlu2 %v183_v9 }
  0x16   :  { %103 = vperm.xlu2 %171, %v221_v3  }
  0x1b   :  { %168 = vset.pattern.permute.xlu0 %v184_v10 }
  0x1c   :  { %79 = vperm.xlu0 %168, %v221_v3  }
  0x1e   :  { %172 = vset.pattern.permute.xlu2 %v185_v11 }
  0x1f   :  { %111 = vperm.xlu2 %172, %v221_v3  }
  0x24   :  { %174 = vset.pattern.permute.xlu0 %v186_v27 }
  0x27   :  { %173 = vset.pattern.permute.xlu2 %v186_v27 }
  0x5e   :  { %v64_v32 = vpop.permute.xlu2 %63 }
  0x5f   :  { %vm65_vm0 = vcmp.eq.s32.totalorder %v60_v34, %v64_v32 }
  0x67   :  { %v88_v42 = vpop.permute.xlu2 %87 }
  0x68   :  { %vm89_vm3 = vcmp.eq.s32.totalorder %v60_v34, %v88_v42 }
  0x70   :  { %v104_v46 = vpop.permute.xlu2 %103 }
  0x71   :  { %vm105_vm5 = vcmp.eq.s32.totalorder %v60_v34, %v104_v46 }
  0x74   :  { %v39_v12 = vpop.permute.xlu1 %38  ;;  %v29_v13 = vpop.permute.xlu0 %28 }
  0x75   :  { %v46_v18 = vmul.f32 %v29_v13, %v18_v14  ;;  %v48_v22 = vmul.f32 %v39_v12, %v20_v16 }
  0x79   :  { %v112_v48 = vpop.permute.xlu2 %111 }
  0x7a   :  { %vm113_vm6 = vcmp.eq.s32.totalorder %v60_v34, %v112_v48 }
  0x7c   :  { %v34_v17 = vpop.permute.xlu0 %33  ;;  %v44_v20 = vpop.permute.xlu1 %43 }
  0x7d   :  { %v47_v19 = vmul.f32 %v34_v17, %v19_v15  ;;  %v49_v24 = vmul.f32 %v44_v20, %v21_v21 }
  0x7f   :  { %v50_v23 = vadd.f32 %v47_v19, %v46_v18 }
  0x81   :  { %v51_v25 = vadd.f32 %v50_v23, %v48_v22 }
  0x83   :  { %v52_v26 = vadd.f32 %v51_v25, %v49_v24 }
  0x85   :  { %v53_v28 = vrot.slane %v52_v26, 4  ;;  %v72_v29 = vpop.permute.xlu0 %71  ;;  %v96_v43 = vpop.permute.xlu1 %95 }
  0x86   :  { %vm73_vm1 = vcmp.eq.s32.totalorder %v60_v34, %v72_v29  ;;  %vm97_vm4 = vcmp.eq.s32.totalorder %v60_v34, %v96_v43 }
  0x87   :  { %v54_v31 = vadd.f32 %v53_v28, %v52_v26 }
  0x89   :  { %v55_v33 = vrot.slane %v54_v31, 2 }
  0x8b   :  { %v56_v35 = vadd.f32 %v55_v33, %v54_v31 }
  0x8d   :  { %v57_v36 = vrot.slane %v56_v35, 1 }
  0x8e   :  { %v80_v37 = vpop.permute.xlu0 %79 }
  0x8f   :  { %v58_v38 = vadd.f32 %v57_v36, %v56_v35  ;;  %vm81_vm2 = vcmp.eq.s32.totalorder %v60_v34, %v80_v37 }
  0x91   :  { %v74_v39 = vsel %vm73_vm1, %v58_v38, 0.0  ;;  %v82_v40 = vsel %vm81_vm2, %v58_v38, 0.0  ;;  %v66_v41 = vsel %vm65_vm0, %v58_v38, 0.0  ;;  %v98_v44 = vsel %vm97_vm4, %v58_v38, 0.0 }
  0x92   :  { %75 = vadd.xlane.f32.xlu1 %v74_v39  ;;  %83 = vadd.xlane.f32.xlu0 %v82_v40  ;;  %v90_v45 = vsel %vm89_vm3, %v58_v38, 0.0  ;;  %v106_v47 = vsel %vm105_vm5, %v58_v38, 0.0  ;;  %v114_v49 = vsel %vm113_vm6, %v58_v38, 0.0 }
  0x93   :  { %67 = vadd.xlane.f32.xlu2 %v66_v41 }
  0x9a   :  { %99 = vadd.xlane.f32.xlu0 %v98_v44  ;;  %91 = vadd.xlane.f32.xlu1 %v90_v45 }
  0xa2   :  { %107 = vadd.xlane.f32.xlu1 %v106_v47 }
  0xab   :  { %119 = vperm.xlu2 %173, %v221_v3   ;;  %v128_v3 = vstv %s258_s3 }
  0xd4   :  { %115 = vadd.xlane.f32.xlu2 %v114_v49 }
 0x105   :  { %v76_v53 = vpop.xlane.xlu1 %75  ;;  %v84_v54 = vpop.xlane.xlu0 %83 }
 0x106   :  { %v68_v50 = vpop.xlane.xlu2 %67 }
 0x107   :  { %v77_v56 = vadd.f32 %v76_v53, %v68_v50 }
 0x109   :  { %v85_v57 = vadd.f32 %v84_v54, %v77_v56 }
 0x10d   :  { %v92_v55 = vpop.xlane.xlu1 %91  ;;  %v100_v59 = vpop.xlane.xlu0 %99 }
 0x10e   :  { %v120_v51 = vpop.permute.xlu2 %119  ;;  %v93_v58 = vadd.f32 %v92_v55, %v85_v57 }
 0x10f   :  { %vm121_vm7 = vcmp.eq.s32.totalorder %v60_v34, %v120_v51 }
 0x110   :  { %v122_v52 = vsel %vm121_vm7, %v58_v38, 0.0  ;;  %v101_v61 = vadd.f32 %v100_v59, %v93_v58 }
 0x111   :  { %123 = vadd.xlane.f32.xlu0 %v122_v52 }
 0x115   :  { %v108_v60 = vpop.xlane.xlu1 %107 }
 0x116   :  { %v109_v63 = vadd.f32 %v108_v60, %v101_v61 }
 0x147   :  { %v116_v62 = vpop.xlane.xlu2 %115 }
 0x148   :  { %v117_v0 = vadd.f32 %v116_v62, %v109_v63 }
 0x184   :  { %v124_v1 = vpop.xlane.xlu0 %123 }
 0x185   :  { %v125_v2 = vadd.f32 %v124_v1, %v117_v0 }
 0x187   :  { %v126_v4 = vmul.f32 0.125, %v125_v2 }
 0x189   :  { %v129_v5 = vadd.f32 %v128_v3, %v126_v4 }
 0x18b   :  { %v155_v6 = vmul.f32 -1.442695, %v129_v5 }
 0x18d   :  { %175 = vpow2.f32 %v155_v6 }
 0x193   :  { %v176_v7 = vpop.eup %175 }
 0x194   :  { %v133_v8 = vadd.f32 1.0, %v176_v7 }
 0x196   :  { %177 = vrcp.f32 %v133_v8  ;;  %v145_v12 = vand.u32 2147483648, %v133_v8  ;;  %v143_v14 = vand.u32 2147483647, %v133_v8  ;;  %vm139_vm9 = vweird.f32 %v133_v8 }
 0x198   :  { %v146_v16 = vor.u32 1.1754944e-38, %v145_v12  ;;  %vm144_vm12 = vcmp.eq.f32.partialorder %v143_v14, 8.507059e+37 }
 0x19c   :  { %v178_v9 = vpop.eup %177 }
 0x19d   :  { %v135_v10 = vmul.f32 %v178_v9, %v133_v8  ;;  %vm140_vm8 = vweird.f32 %v178_v9 }
 0x19e   :  { %vm141_vm11 = vmor %vm139_vm9, %vm140_vm8 }
 0x19f   :  { %v136_v11 = vsub.f32 1.0, %v135_v10 }
 0x1a1   :  { %v137_v13 = vmul.f32 %v178_v9, %v136_v11 }
 0x1a3   :  { %v138_v15 = vadd.f32 %v178_v9, %v137_v13 }
 0x1a5   :  { %v142_v17 = vsel %vm141_vm11, %v178_v9, %v138_v15 }
 0x1a6   :  { %v147_v18 = vsel %vm144_vm12, %v146_v16, %v142_v17 }
 0x1a7   :  { %150 = vst.msk [vmem:[%s259_s4] sm:$0xff] %vm149_vm10, %v147_v18 }

</bundles_post_ra>
